<compile_context>
chip_gen: v6e
topology: v6e:2x2x1
jax: 0.10.0
libtpu: 0.0.40
codegen_flags: <defaults>
</compile_context>

<pallas_src>
import math

import numpy as np
import jax
import jax.numpy as jnp
from jax import lax
from jax.experimental import pallas as pl
from jax.experimental.pallas import tpu as pltpu

MEAN_FACTOR = 10.0
STD_FACTOR = 5.0


# ----------------------------------------------------------------------------
# Fused Manager kernel
# ----------------------------------------------------------------------------

def _manager_kernel(sel_ref, zero_ref,            # scalar-prefetch (SMEM) tables
                    x_ref, w_ref, b_ref, eps_ref,  # VMEM inputs
                    o_ref,                         # VMEM output
                    z_ref):                        # VMEM scratch (pre-expansion goals)
    # (1) Linear projection (nn.Dropout == identity in eval mode).
    #     bf16 operands feed the MXU at full rate on v6e/v7x; accumulation is f32.
    y = jnp.dot(x_ref[...].astype(jnp.bfloat16),
                w_ref[...].astype(jnp.bfloat16),
                preferred_element_type=jnp.float32) + b_ref[...]

    # (2) Exploration noise: noise = mean/10 + (std/5) * eps - 0.5 * mean/10,
    #     broadcast over every (b, t) row.  All VPU math in f32.
    mu = jnp.mean(y)
    std = jnp.sqrt(jnp.mean(jnp.square(y - mu))) / STD_FACTOR
    mean = mu / MEAN_FACTOR
    z_ref[...] = y + (mean + std * eps_ref[...] - 0.5 * mean)

    # (3) expand_goals: row i of the output is row sel[i] of z (its next segment
    #     marker, or itself), zeroed where the torch loop would have zeroed it.
    n_rows = o_ref.shape[0]

    def copy_row(i, carry):
        src = sel_ref[i]                                   # SMEM scalar read
        keep = 1.0 - zero_ref[i].astype(jnp.float32)       # 0.0 or 1.0
        o_ref[pl.ds(i, 1), :] = z_ref[pl.ds(src, 1), :] * keep
        return carry

    lax.fori_loop(0, n_rows, copy_row, 0, unroll=True)


def _expand_goal_indices(segment_mask):
    """Turn the critic mask into (flat source row, zero flag) per output row.

    Reproduces the torch in-place loop exactly:
      * position t takes the value of the next marker l >= t in its batch row,
      * positions after a batch's last marker are zeroed iff some LATER batch
        also has a marker (and batch 0 is fully zeroed if it has no markers but
        a later batch does),
      * otherwise the value passes through unchanged.
    """
    B, S = segment_mask.shape
    m = segment_mask != 0
    idx = jnp.arange(S, dtype=jnp.int32)

    # next marker position >= t within the batch row (else S)
    cand = jnp.where(m[:, None, :] & (idx[None, None, :] >= idx[None, :, None]),
                     idx[None, None, :], S)
    nxt = jnp.min(cand, axis=-1).astype(jnp.int32)                  # (B, S)
    valid = nxt < S
    sel = jnp.where(valid, nxt, idx[None, :])                       # self when no marker
    flat_sel = (jnp.arange(B, dtype=jnp.int32)[:, None] * S + sel).reshape(-1)

    has = jnp.any(m, axis=1)                                        # batch has a marker
    later = jnp.flip(jnp.cumsum(jnp.flip(has.astype(jnp.int32)))) - has.astype(jnp.int32)
    later_has = later > 0                                           # some later batch has one
    zero_batch = later_has & (has | (jnp.arange(B) == 0))
    zero = ((~valid) & zero_batch[:, None]).reshape(-1).astype(jnp.int32)
    return flat_sel.astype(jnp.int32), zero


def manager_forward(params, x, critic_mask, key):
    """x: (B, S, d_model_caps), critic_mask: (B, S) -> goals (B, S, d_goal)."""
    B, S, d_in = x.shape
    d_goal = params["w"].shape[1]
    M = B * S

    # torch.empty(d_goal).normal_(mean, std) -> standard normal drawn here, scaled
    # by the in-kernel mean/std (same distribution; different RNG stream than torch).
    eps = jax.random.normal(key, (1, d_goal), jnp.float32)
    flat_sel, zero_flags = _expand_goal_indices(critic_mask)

    grid_spec = pltpu.PrefetchScalarGridSpec(
        num_scalar_prefetch=2,                 # flat_sel, zero_flags -> SMEM
        grid=(1,),
        in_specs=[
            pl.BlockSpec((M, d_in), lambda i, sel, zf: (0, 0)),       # x
            pl.BlockSpec((d_in, d_goal), lambda i, sel, zf: (0, 0)),  # W
            pl.BlockSpec((1, d_goal), lambda i, sel, zf: (0, 0)),     # b
            pl.BlockSpec((1, d_goal), lambda i, sel, zf: (0, 0)),     # eps
        ],
        out_specs=pl.BlockSpec((M, d_goal), lambda i, sel, zf: (0, 0)),
        scratch_shapes=[pltpu.VMEM((M, d_goal), jnp.float32)],
    )

    out = pl.pallas_call(
        _manager_kernel,
        out_shape=jax.ShapeDtypeStruct((M, d_goal), jnp.float32),
        grid_spec=grid_spec,
        compiler_params=pltpu.CompilerParams(
            dimension_semantics=("arbitrary",),
            vmem_limit_bytes=32 * 1024 * 1024,   # fits v7x's scoped VMEM with headroom
        ),
    )(flat_sel, zero_flags, x.reshape(M, d_in), params["w"],
      params["b"].reshape(1, d_goal), eps)

    return out.reshape(B, S, d_goal)


# ----------------------------------------------------------------------------
# Pure-numpy reference mirroring the torch module literally (for validation)
# ----------------------------------------------------------------------------

def _manager_reference(x, w, b, eps, segment_mask):
    B, S, _ = x.shape
    y = x.reshape(-1, x.shape[-1]).astype(np.float32) @ w.astype(np.float32)
    y = (y + b.astype(np.float32)).reshape(B, S, -1)
    mu = y.mean()
    std = np.sqrt(np.mean(np.abs(y - mu) ** 2)) / STD_FACTOR
    mean = mu / MEAN_FACTOR
    y = y + (mean + std * eps.astype(np.float32) - 0.5 * mean)
    # expand_goals: literal transcription of the torch in-place loop
    nz = np.argwhere(np.asarray(segment_mask) != 0)      # row-major, like torch.nonzero
    old_l = old_b = 0
    for bb, ll in nz:
        goal = y[bb, ll].copy()
        if bb != old_b:
            y[old_b, old_l:] = 0
            old_l = 0
            old_b = bb
        y[bb, old_l:ll + 1] = goal
        old_l = ll + 1
    return y


# ----------------------------------------------------------------------------
# Driver
# ----------------------------------------------------------------------------

if __name__ == "__main__":
    B, S = 2, 8
    D_MODEL_CAPS, D_GOAL = 128, 128          # lane-dense (multiple of 128) feature dims

    key = jax.random.PRNGKey(0)
    k_w, k_b, k_x, k_noise = jax.random.split(key, 4)

    bound = 1.0 / math.sqrt(D_MODEL_CAPS)    # nn.Linear default init
    params = {
        "w": jax.random.uniform(k_w, (D_MODEL_CAPS, D_GOAL), jnp.float32, -bound, bound),
        "b": jax.random.uniform(k_b, (D_GOAL,), jnp.float32, -bound, bound),
    }
    x = jax.random.normal(k_x, (B, S, D_MODEL_CAPS), jnp.float32)
    # critic mask: batch 0 has segment markers at t=2,5; batch 1 at t=3
    critic_mask = (jnp.zeros((B, S), jnp.int32)
                   .at[0, 2].set(1).at[0, 5].set(1).at[1, 3].set(1))

    fwd = jax.jit(manager_forward)
    goals = fwd(params, x, critic_mask, k_noise)
    jax.block_until_ready(goals)

    # Validate against the f32 numpy reference (kernel matmul is bf16 -> loose tol).
    eps_np = np.asarray(jax.random.normal(k_noise, (1, D_GOAL), jnp.float32))
    ref = _manager_reference(np.asarray(x), np.asarray(params["w"]),
                             np.asarray(params["b"]), eps_np, np.asarray(critic_mask))

    assert goals.shape == (B, S, D_GOAL)
    assert bool(jnp.all(jnp.isfinite(goals)))
    max_err = float(np.max(np.abs(np.asarray(goals, np.float64) - ref.astype(np.float64))))
    assert np.allclose(np.asarray(goals), ref, rtol=5e-2, atol=5e-2), max_err

    print("KERNEL_OK")
</pallas_src>

<mosaic_0001>
module attributes {stable_mosaic.version = 11 : i64} {
  func.func @_manager_kernel(%arg0: i32, %arg1: memref<16xi32, #tpu.memory_space<smem>>, %arg2: memref<16xi32, #tpu.memory_space<smem>>, %arg3: memref<16x128xf32, #tpu.memory_space<vmem>>, %arg4: memref<128x128xf32, #tpu.memory_space<vmem>>, %arg5: memref<1x128xf32, #tpu.memory_space<vmem>>, %arg6: memref<1x128xf32, #tpu.memory_space<vmem>>, %arg7: memref<16x128xf32, #tpu.memory_space<vmem>>, %arg8: memref<16x128xf32, #tpu.memory_space<vmem>>) attributes {dimension_semantics = [#tpu.dimension_semantics<arbitrary>], iteration_bounds = array<i64: 1>, scalar_prefetch = 2 : i64, scratch_operands = 1 : i64, tpu.core_type = #tpu.core_type<tc>, window_params = [{pipeline_mode = #tpu.pipeline_mode<synchronous>, transform_indices = @transform_0, window_bounds = array<i64: 16, 128>}, {pipeline_mode = #tpu.pipeline_mode<synchronous>, transform_indices = @transform_1, window_bounds = array<i64: 128, 128>}, {pipeline_mode = #tpu.pipeline_mode<synchronous>, transform_indices = @transform_2, window_bounds = array<i64: 1, 128>}, {pipeline_mode = #tpu.pipeline_mode<synchronous>, transform_indices = @transform_3, window_bounds = array<i64: 1, 128>}, {pipeline_mode = #tpu.pipeline_mode<synchronous>, transform_indices = @transform_4, window_bounds = array<i64: 16, 128>}]} {
    %c0 = arith.constant 0 : index
    %c0_0 = arith.constant 0 : index
    %0 = vector.load %arg3[%c0, %c0_0] : memref<16x128xf32, #tpu.memory_space<vmem>>, vector<16x128xf32>
    %1 = arith.truncf %0 : vector<16x128xf32> to vector<16x128xbf16>
    %c0_1 = arith.constant 0 : index
    %c0_2 = arith.constant 0 : index
    %2 = vector.load %arg4[%c0_1, %c0_2] : memref<128x128xf32, #tpu.memory_space<vmem>>, vector<128x128xf32>
    %3 = arith.truncf %2 : vector<128x128xf32> to vector<128x128xbf16>
    %cst = arith.constant dense<0.000000e+00> : vector<16x128xf32>
    %4 = tpu.matmul %1, %3, %cst {dimension_numbers = #tpu.dot_dimension_numbers<[1], [0], [0], [1], [0, 0, 1, 1], [], []>} : vector<16x128xbf16>, vector<128x128xbf16>, vector<16x128xf32> -> vector<16x128xf32>
    %c0_3 = arith.constant 0 : index
    %c0_4 = arith.constant 0 : index
    %5 = vector.load %arg5[%c0_3, %c0_4] : memref<1x128xf32, #tpu.memory_space<vmem>>, vector<1x128xf32>
    %6 = vector.broadcast %5 : vector<1x128xf32> to vector<16x128xf32>
    %7 = arith.addf %4, %6 : vector<16x128xf32>
    %8 = vector.shape_cast %7 : vector<16x128xf32> to vector<1x16x128xf32>
    %cst_5 = arith.constant dense<0.000000e+00> : vector<1xf32>
    %9 = vector.multi_reduction <add>, %8, %cst_5 [1, 2] : vector<1x16x128xf32> to vector<1xf32>
    %10 = vector.shape_cast %9 : vector<1xf32> to vector<1x1x1xf32>
    %11 = vector.extract %10[0, 0, 0] : f32 from vector<1x1x1xf32>
    %cst_6 = arith.constant 2.048000e+03 : f32
    %12 = arith.divf %11, %cst_6 : f32
    %13 = vector.broadcast %12 : f32 to vector<16x128xf32>
    %14 = arith.subf %7, %13 : vector<16x128xf32>
    %15 = arith.mulf %14, %14 : vector<16x128xf32>
    %16 = vector.shape_cast %15 : vector<16x128xf32> to vector<1x16x128xf32>
    %cst_7 = arith.constant dense<0.000000e+00> : vector<1xf32>
    %17 = vector.multi_reduction <add>, %16, %cst_7 [1, 2] : vector<1x16x128xf32> to vector<1xf32>
    %18 = vector.shape_cast %17 : vector<1xf32> to vector<1x1x1xf32>
    %19 = vector.extract %18[0, 0, 0] : f32 from vector<1x1x1xf32>
    %cst_8 = arith.constant 2.048000e+03 : f32
    %20 = arith.divf %19, %cst_8 : f32
    %21 = math.sqrt %20 : f32
    %cst_9 = arith.constant 5.000000e+00 : f32
    %22 = arith.divf %21, %cst_9 : f32
    %cst_10 = arith.constant 1.000000e+01 : f32
    %23 = arith.divf %12, %cst_10 : f32
    %c0_11 = arith.constant 0 : index
    %c0_12 = arith.constant 0 : index
    %24 = vector.load %arg6[%c0_11, %c0_12] : memref<1x128xf32, #tpu.memory_space<vmem>>, vector<1x128xf32>
    %25 = vector.broadcast %22 : f32 to vector<1x128xf32>
    %26 = arith.mulf %25, %24 : vector<1x128xf32>
    %27 = vector.broadcast %23 : f32 to vector<1x128xf32>
    %28 = arith.addf %27, %26 : vector<1x128xf32>
    %cst_13 = arith.constant 5.000000e-01 : f32
    %29 = arith.mulf %cst_13, %23 : f32
    %30 = vector.broadcast %29 : f32 to vector<1x128xf32>
    %31 = arith.subf %28, %30 : vector<1x128xf32>
    %32 = vector.broadcast %31 : vector<1x128xf32> to vector<16x128xf32>
    %33 = arith.addf %7, %32 : vector<16x128xf32>
    %c0_14 = arith.constant 0 : index
    %c0_15 = arith.constant 0 : index
    %34 = vector.load %arg8[%c0_14, %c0_15] : memref<16x128xf32, #tpu.memory_space<vmem>>, vector<16x128xf32>
    tpu.vector_store %arg8[%c0_14, %c0_15], %33 {strides = array<i32>} : memref<16x128xf32, #tpu.memory_space<vmem>>, vector<16x128xf32>,
    %c0_i32 = arith.constant 0 : i32
    %35 = arith.index_cast %c0_i32 : i32 to index
    %36 = memref.load %arg1[%35] : memref<16xi32, #tpu.memory_space<smem>>
    %37 = arith.index_cast %c0_i32 : i32 to index
    %38 = memref.load %arg2[%37] : memref<16xi32, #tpu.memory_space<smem>>
    %39 = arith.sitofp %38 : i32 to f32
    %cst_16 = arith.constant 1.000000e+00 : f32
    %40 = arith.subf %cst_16, %39 : f32
    %41 = arith.index_cast %36 : i32 to index
    %c0_17 = arith.constant 0 : index
    %42 = vector.load %arg8[%41, %c0_17] : memref<16x128xf32, #tpu.memory_space<vmem>>, vector<1x128xf32>
    %43 = vector.broadcast %40 : f32 to vector<1x128xf32>
    %44 = arith.mulf %42, %43 : vector<1x128xf32>
    %45 = arith.index_cast %c0_i32 : i32 to index
    %c0_18 = arith.constant 0 : index
    %46 = vector.load %arg7[%45, %c0_18] : memref<16x128xf32, #tpu.memory_space<vmem>>, vector<1x128xf32>
    tpu.vector_store %arg7[%45, %c0_18], %44 {strides = array<i32>} : memref<16x128xf32, #tpu.memory_space<vmem>>, vector<1x128xf32>,
    %c1_i32 = arith.constant 1 : i32
    %47 = arith.index_cast %c1_i32 : i32 to index
    %48 = memref.load %arg1[%47] : memref<16xi32, #tpu.memory_space<smem>>
    %49 = arith.index_cast %c1_i32 : i32 to index
    %50 = memref.load %arg2[%49] : memref<16xi32, #tpu.memory_space<smem>>
    %51 = arith.sitofp %50 : i32 to f32
    %cst_19 = arith.constant 1.000000e+00 : f32
    %52 = arith.subf %cst_19, %51 : f32
    %53 = arith.index_cast %48 : i32 to index
    %c0_20 = arith.constant 0 : index
    %54 = vector.load %arg8[%53, %c0_20] : memref<16x128xf32, #tpu.memory_space<vmem>>, vector<1x128xf32>
    %55 = vector.broadcast %52 : f32 to vector<1x128xf32>
    %56 = arith.mulf %54, %55 : vector<1x128xf32>
    %57 = arith.index_cast %c1_i32 : i32 to index
    %c0_21 = arith.constant 0 : index
    %58 = vector.load %arg7[%57, %c0_21] : memref<16x128xf32, #tpu.memory_space<vmem>>, vector<1x128xf32>
    tpu.vector_store %arg7[%57, %c0_21], %56 {strides = array<i32>} : memref<16x128xf32, #tpu.memory_space<vmem>>, vector<1x128xf32>,
    %c2_i32 = arith.constant 2 : i32
    %59 = arith.index_cast %c2_i32 : i32 to index
    %60 = memref.load %arg1[%59] : memref<16xi32, #tpu.memory_space<smem>>
    %61 = arith.index_cast %c2_i32 : i32 to index
    %62 = memref.load %arg2[%61] : memref<16xi32, #tpu.memory_space<smem>>
    %63 = arith.sitofp %62 : i32 to f32
    %cst_22 = arith.constant 1.000000e+00 : f32
    %64 = arith.subf %cst_22, %63 : f32
    %65 = arith.index_cast %60 : i32 to index
    %c0_23 = arith.constant 0 : index
    %66 = vector.load %arg8[%65, %c0_23] : memref<16x128xf32, #tpu.memory_space<vmem>>, vector<1x128xf32>
    %67 = vector.broadcast %64 : f32 to vector<1x128xf32>
    %68 = arith.mulf %66, %67 : vector<1x128xf32>
    %69 = arith.index_cast %c2_i32 : i32 to index
    %c0_24 = arith.constant 0 : index
    %70 = vector.load %arg7[%69, %c0_24] : memref<16x128xf32, #tpu.memory_space<vmem>>, vector<1x128xf32>
    tpu.vector_store %arg7[%69, %c0_24], %68 {strides = array<i32>} : memref<16x128xf32, #tpu.memory_space<vmem>>, vector<1x128xf32>,
    %c3_i32 = arith.constant 3 : i32
    %71 = arith.index_cast %c3_i32 : i32 to index
    %72 = memref.load %arg1[%71] : memref<16xi32, #tpu.memory_space<smem>>
    %73 = arith.index_cast %c3_i32 : i32 to index
    %74 = memref.load %arg2[%73] : memref<16xi32, #tpu.memory_space<smem>>
    %75 = arith.sitofp %74 : i32 to f32
    %cst_25 = arith.constant 1.000000e+00 : f32
    %76 = arith.subf %cst_25, %75 : f32
    %77 = arith.index_cast %72 : i32 to index
    %c0_26 = arith.constant 0 : index
    %78 = vector.load %arg8[%77, %c0_26] : memref<16x128xf32, #tpu.memory_space<vmem>>, vector<1x128xf32>
    %79 = vector.broadcast %76 : f32 to vector<1x128xf32>
    %80 = arith.mulf %78, %79 : vector<1x128xf32>
    %81 = arith.index_cast %c3_i32 : i32 to index
    %c0_27 = arith.constant 0 : index
    %82 = vector.load %arg7[%81, %c0_27] : memref<16x128xf32, #tpu.memory_space<vmem>>, vector<1x128xf32>
    tpu.vector_store %arg7[%81, %c0_27], %80 {strides = array<i32>} : memref<16x128xf32, #tpu.memory_space<vmem>>, vector<1x128xf32>,
    %c4_i32 = arith.constant 4 : i32
    %83 = arith.index_cast %c4_i32 : i32 to index
    %84 = memref.load %arg1[%83] : memref<16xi32, #tpu.memory_space<smem>>
    %85 = arith.index_cast %c4_i32 : i32 to index
    %86 = memref.load %arg2[%85] : memref<16xi32, #tpu.memory_space<smem>>
    %87 = arith.sitofp %86 : i32 to f32
    %cst_28 = arith.constant 1.000000e+00 : f32
    %88 = arith.subf %cst_28, %87 : f32
    %89 = arith.index_cast %84 : i32 to index
    %c0_29 = arith.constant 0 : index
    %90 = vector.load %arg8[%89, %c0_29] : memref<16x128xf32, #tpu.memory_space<vmem>>, vector<1x128xf32>
    %91 = vector.broadcast %88 : f32 to vector<1x128xf32>
    %92 = arith.mulf %90, %91 : vector<1x128xf32>
    %93 = arith.index_cast %c4_i32 : i32 to index
    %c0_30 = arith.constant 0 : index
    %94 = vector.load %arg7[%93, %c0_30] : memref<16x128xf32, #tpu.memory_space<vmem>>, vector<1x128xf32>
    tpu.vector_store %arg7[%93, %c0_30], %92 {strides = array<i32>} : memref<16x128xf32, #tpu.memory_space<vmem>>, vector<1x128xf32>,
    %c5_i32 = arith.constant 5 : i32
    %95 = arith.index_cast %c5_i32 : i32 to index
    %96 = memref.load %arg1[%95] : memref<16xi32, #tpu.memory_space<smem>>
    %97 = arith.index_cast %c5_i32 : i32 to index
    %98 = memref.load %arg2[%97] : memref<16xi32, #tpu.memory_space<smem>>
    %99 = arith.sitofp %98 : i32 to f32
    %cst_31 = arith.constant 1.000000e+00 : f32
    %100 = arith.subf %cst_31, %99 : f32
    %101 = arith.index_cast %96 : i32 to index
    %c0_32 = arith.constant 0 : index
    %102 = vector.load %arg8[%101, %c0_32] : memref<16x128xf32, #tpu.memory_space<vmem>>, vector<1x128xf32>
    %103 = vector.broadcast %100 : f32 to vector<1x128xf32>
    %104 = arith.mulf %102, %103 : vector<1x128xf32>
    %105 = arith.index_cast %c5_i32 : i32 to index
    %c0_33 = arith.constant 0 : index
    %106 = vector.load %arg7[%105, %c0_33] : memref<16x128xf32, #tpu.memory_space<vmem>>, vector<1x128xf32>
    tpu.vector_store %arg7[%105, %c0_33], %104 {strides = array<i32>} : memref<16x128xf32, #tpu.memory_space<vmem>>, vector<1x128xf32>,
    %c6_i32 = arith.constant 6 : i32
    %107 = arith.index_cast %c6_i32 : i32 to index
    %108 = memref.load %arg1[%107] : memref<16xi32, #tpu.memory_space<smem>>
    %109 = arith.index_cast %c6_i32 : i32 to index
    %110 = memref.load %arg2[%109] : memref<16xi32, #tpu.memory_space<smem>>
    %111 = arith.sitofp %110 : i32 to f32
    %cst_34 = arith.constant 1.000000e+00 : f32
    %112 = arith.subf %cst_34, %111 : f32
    %113 = arith.index_cast %108 : i32 to index
    %c0_35 = arith.constant 0 : index
    %114 = vector.load %arg8[%113, %c0_35] : memref<16x128xf32, #tpu.memory_space<vmem>>, vector<1x128xf32>
    %115 = vector.broadcast %112 : f32 to vector<1x128xf32>
    %116 = arith.mulf %114, %115 : vector<1x128xf32>
    %117 = arith.index_cast %c6_i32 : i32 to index
    %c0_36 = arith.constant 0 : index
    %118 = vector.load %arg7[%117, %c0_36] : memref<16x128xf32, #tpu.memory_space<vmem>>, vector<1x128xf32>
    tpu.vector_store %arg7[%117, %c0_36], %116 {strides = array<i32>} : memref<16x128xf32, #tpu.memory_space<vmem>>, vector<1x128xf32>,
    %c7_i32 = arith.constant 7 : i32
    %119 = arith.index_cast %c7_i32 : i32 to index
    %120 = memref.load %arg1[%119] : memref<16xi32, #tpu.memory_space<smem>>
    %121 = arith.index_cast %c7_i32 : i32 to index
    %122 = memref.load %arg2[%121] : memref<16xi32, #tpu.memory_space<smem>>
    %123 = arith.sitofp %122 : i32 to f32
    %cst_37 = arith.constant 1.000000e+00 : f32
    %124 = arith.subf %cst_37, %123 : f32
    %125 = arith.index_cast %120 : i32 to index
    %c0_38 = arith.constant 0 : index
    %126 = vector.load %arg8[%125, %c0_38] : memref<16x128xf32, #tpu.memory_space<vmem>>, vector<1x128xf32>
    %127 = vector.broadcast %124 : f32 to vector<1x128xf32>
    %128 = arith.mulf %126, %127 : vector<1x128xf32>
    %129 = arith.index_cast %c7_i32 : i32 to index
    %c0_39 = arith.constant 0 : index
    %130 = vector.load %arg7[%129, %c0_39] : memref<16x128xf32, #tpu.memory_space<vmem>>, vector<1x128xf32>
    tpu.vector_store %arg7[%129, %c0_39], %128 {strides = array<i32>} : memref<16x128xf32, #tpu.memory_space<vmem>>, vector<1x128xf32>,
    %c8_i32 = arith.constant 8 : i32
    %131 = arith.index_cast %c8_i32 : i32 to index
    %132 = memref.load %arg1[%131] : memref<16xi32, #tpu.memory_space<smem>>
    %133 = arith.index_cast %c8_i32 : i32 to index
    %134 = memref.load %arg2[%133] : memref<16xi32, #tpu.memory_space<smem>>
    %135 = arith.sitofp %134 : i32 to f32
    %cst_40 = arith.constant 1.000000e+00 : f32
    %136 = arith.subf %cst_40, %135 : f32
    %137 = arith.index_cast %132 : i32 to index
    %c0_41 = arith.constant 0 : index
    %138 = vector.load %arg8[%137, %c0_41] : memref<16x128xf32, #tpu.memory_space<vmem>>, vector<1x128xf32>
    %139 = vector.broadcast %136 : f32 to vector<1x128xf32>
    %140 = arith.mulf %138, %139 : vector<1x128xf32>
    %141 = arith.index_cast %c8_i32 : i32 to index
    %c0_42 = arith.constant 0 : index
    %142 = vector.load %arg7[%141, %c0_42] : memref<16x128xf32, #tpu.memory_space<vmem>>, vector<1x128xf32>
    tpu.vector_store %arg7[%141, %c0_42], %140 {strides = array<i32>} : memref<16x128xf32, #tpu.memory_space<vmem>>, vector<1x128xf32>,
    %c9_i32 = arith.constant 9 : i32
    %143 = arith.index_cast %c9_i32 : i32 to index
    %144 = memref.load %arg1[%143] : memref<16xi32, #tpu.memory_space<smem>>
    %145 = arith.index_cast %c9_i32 : i32 to index
    %146 = memref.load %arg2[%145] : memref<16xi32, #tpu.memory_space<smem>>
    %147 = arith.sitofp %146 : i32 to f32
    %cst_43 = arith.constant 1.000000e+00 : f32
    %148 = arith.subf %cst_43, %147 : f32
    %149 = arith.index_cast %144 : i32 to index
    %c0_44 = arith.constant 0 : index
    %150 = vector.load %arg8[%149, %c0_44] : memref<16x128xf32, #tpu.memory_space<vmem>>, vector<1x128xf32>
    %151 = vector.broadcast %148 : f32 to vector<1x128xf32>
    %152 = arith.mulf %150, %151 : vector<1x128xf32>
    %153 = arith.index_cast %c9_i32 : i32 to index
    %c0_45 = arith.constant 0 : index
    %154 = vector.load %arg7[%153, %c0_45] : memref<16x128xf32, #tpu.memory_space<vmem>>, vector<1x128xf32>
    tpu.vector_store %arg7[%153, %c0_45], %152 {strides = array<i32>} : memref<16x128xf32, #tpu.memory_space<vmem>>, vector<1x128xf32>,
    %c10_i32 = arith.constant 10 : i32
    %155 = arith.index_cast %c10_i32 : i32 to index
    %156 = memref.load %arg1[%155] : memref<16xi32, #tpu.memory_space<smem>>
    %157 = arith.index_cast %c10_i32 : i32 to index
    %158 = memref.load %arg2[%157] : memref<16xi32, #tpu.memory_space<smem>>
    %159 = arith.sitofp %158 : i32 to f32
    %cst_46 = arith.constant 1.000000e+00 : f32
    %160 = arith.subf %cst_46, %159 : f32
    %161 = arith.index_cast %156 : i32 to index
    %c0_47 = arith.constant 0 : index
    %162 = vector.load %arg8[%161, %c0_47] : memref<16x128xf32, #tpu.memory_space<vmem>>, vector<1x128xf32>
    %163 = vector.broadcast %160 : f32 to vector<1x128xf32>
    %164 = arith.mulf %162, %163 : vector<1x128xf32>
    %165 = arith.index_cast %c10_i32 : i32 to index
    %c0_48 = arith.constant 0 : index
    %166 = vector.load %arg7[%165, %c0_48] : memref<16x128xf32, #tpu.memory_space<vmem>>, vector<1x128xf32>
    tpu.vector_store %arg7[%165, %c0_48], %164 {strides = array<i32>} : memref<16x128xf32, #tpu.memory_space<vmem>>, vector<1x128xf32>,
    %c11_i32 = arith.constant 11 : i32
    %167 = arith.index_cast %c11_i32 : i32 to index
    %168 = memref.load %arg1[%167] : memref<16xi32, #tpu.memory_space<smem>>
    %169 = arith.index_cast %c11_i32 : i32 to index
    %170 = memref.load %arg2[%169] : memref<16xi32, #tpu.memory_space<smem>>
    %171 = arith.sitofp %170 : i32 to f32
    %cst_49 = arith.constant 1.000000e+00 : f32
    %172 = arith.subf %cst_49, %171 : f32
    %173 = arith.index_cast %168 : i32 to index
    %c0_50 = arith.constant 0 : index
    %174 = vector.load %arg8[%173, %c0_50] : memref<16x128xf32, #tpu.memory_space<vmem>>, vector<1x128xf32>
    %175 = vector.broadcast %172 : f32 to vector<1x128xf32>
    %176 = arith.mulf %174, %175 : vector<1x128xf32>
    %177 = arith.index_cast %c11_i32 : i32 to index
    %c0_51 = arith.constant 0 : index
    %178 = vector.load %arg7[%177, %c0_51] : memref<16x128xf32, #tpu.memory_space<vmem>>, vector<1x128xf32>
    tpu.vector_store %arg7[%177, %c0_51], %176 {strides = array<i32>} : memref<16x128xf32, #tpu.memory_space<vmem>>, vector<1x128xf32>,
    %c12_i32 = arith.constant 12 : i32
    %179 = arith.index_cast %c12_i32 : i32 to index
    %180 = memref.load %arg1[%179] : memref<16xi32, #tpu.memory_space<smem>>
    %181 = arith.index_cast %c12_i32 : i32 to index
    %182 = memref.load %arg2[%181] : memref<16xi32, #tpu.memory_space<smem>>
    %183 = arith.sitofp %182 : i32 to f32
    %cst_52 = arith.constant 1.000000e+00 : f32
    %184 = arith.subf %cst_52, %183 : f32
    %185 = arith.index_cast %180 : i32 to index
    %c0_53 = arith.constant 0 : index
    %186 = vector.load %arg8[%185, %c0_53] : memref<16x128xf32, #tpu.memory_space<vmem>>, vector<1x128xf32>
    %187 = vector.broadcast %184 : f32 to vector<1x128xf32>
    %188 = arith.mulf %186, %187 : vector<1x128xf32>
    %189 = arith.index_cast %c12_i32 : i32 to index
    %c0_54 = arith.constant 0 : index
    %190 = vector.load %arg7[%189, %c0_54] : memref<16x128xf32, #tpu.memory_space<vmem>>, vector<1x128xf32>
    tpu.vector_store %arg7[%189, %c0_54], %188 {strides = array<i32>} : memref<16x128xf32, #tpu.memory_space<vmem>>, vector<1x128xf32>,
    %c13_i32 = arith.constant 13 : i32
    %191 = arith.index_cast %c13_i32 : i32 to index
    %192 = memref.load %arg1[%191] : memref<16xi32, #tpu.memory_space<smem>>
    %193 = arith.index_cast %c13_i32 : i32 to index
    %194 = memref.load %arg2[%193] : memref<16xi32, #tpu.memory_space<smem>>
    %195 = arith.sitofp %194 : i32 to f32
    %cst_55 = arith.constant 1.000000e+00 : f32
    %196 = arith.subf %cst_55, %195 : f32
    %197 = arith.index_cast %192 : i32 to index
    %c0_56 = arith.constant 0 : index
    %198 = vector.load %arg8[%197, %c0_56] : memref<16x128xf32, #tpu.memory_space<vmem>>, vector<1x128xf32>
    %199 = vector.broadcast %196 : f32 to vector<1x128xf32>
    %200 = arith.mulf %198, %199 : vector<1x128xf32>
    %201 = arith.index_cast %c13_i32 : i32 to index
    %c0_57 = arith.constant 0 : index
    %202 = vector.load %arg7[%201, %c0_57] : memref<16x128xf32, #tpu.memory_space<vmem>>, vector<1x128xf32>
    tpu.vector_store %arg7[%201, %c0_57], %200 {strides = array<i32>} : memref<16x128xf32, #tpu.memory_space<vmem>>, vector<1x128xf32>,
    %c14_i32 = arith.constant 14 : i32
    %203 = arith.index_cast %c14_i32 : i32 to index
    %204 = memref.load %arg1[%203] : memref<16xi32, #tpu.memory_space<smem>>
    %205 = arith.index_cast %c14_i32 : i32 to index
    %206 = memref.load %arg2[%205] : memref<16xi32, #tpu.memory_space<smem>>
    %207 = arith.sitofp %206 : i32 to f32
    %cst_58 = arith.constant 1.000000e+00 : f32
    %208 = arith.subf %cst_58, %207 : f32
    %209 = arith.index_cast %204 : i32 to index
    %c0_59 = arith.constant 0 : index
    %210 = vector.load %arg8[%209, %c0_59] : memref<16x128xf32, #tpu.memory_space<vmem>>, vector<1x128xf32>
    %211 = vector.broadcast %208 : f32 to vector<1x128xf32>
    %212 = arith.mulf %210, %211 : vector<1x128xf32>
    %213 = arith.index_cast %c14_i32 : i32 to index
    %c0_60 = arith.constant 0 : index
    %214 = vector.load %arg7[%213, %c0_60] : memref<16x128xf32, #tpu.memory_space<vmem>>, vector<1x128xf32>
    tpu.vector_store %arg7[%213, %c0_60], %212 {strides = array<i32>} : memref<16x128xf32, #tpu.memory_space<vmem>>, vector<1x128xf32>,
    %c15_i32 = arith.constant 15 : i32
    %215 = arith.index_cast %c15_i32 : i32 to index
    %216 = memref.load %arg1[%215] : memref<16xi32, #tpu.memory_space<smem>>
    %217 = arith.index_cast %c15_i32 : i32 to index
    %218 = memref.load %arg2[%217] : memref<16xi32, #tpu.memory_space<smem>>
    %219 = arith.sitofp %218 : i32 to f32
    %cst_61 = arith.constant 1.000000e+00 : f32
    %220 = arith.subf %cst_61, %219 : f32
    %221 = arith.index_cast %216 : i32 to index
    %c0_62 = arith.constant 0 : index
    %222 = vector.load %arg8[%221, %c0_62] : memref<16x128xf32, #tpu.memory_space<vmem>>, vector<1x128xf32>
    %223 = vector.broadcast %220 : f32 to vector<1x128xf32>
    %224 = arith.mulf %222, %223 : vector<1x128xf32>
    %225 = arith.index_cast %c15_i32 : i32 to index
    %c0_63 = arith.constant 0 : index
    %226 = vector.load %arg7[%225, %c0_63] : memref<16x128xf32, #tpu.memory_space<vmem>>, vector<1x128xf32>
    tpu.vector_store %arg7[%225, %c0_63], %224 {strides = array<i32>} : memref<16x128xf32, #tpu.memory_space<vmem>>, vector<1x128xf32>,
    %c16_i32 = arith.constant 16 : i32
    return
  }
  func.func @transform_0(%arg0: i32, %arg1: memref<16xi32, #tpu.memory_space<smem>>, %arg2: memref<16xi32, #tpu.memory_space<smem>>) -> (i32, i32) {
    %c0_i32 = arith.constant 0 : i32
    %c0_i32_0 = arith.constant 0 : i32
    %c0_i32_1 = arith.constant 0 : i32
    return %c0_i32, %c0_i32_0 : i32, i32
  }
  func.func @transform_1(%arg0: i32, %arg1: memref<16xi32, #tpu.memory_space<smem>>, %arg2: memref<16xi32, #tpu.memory_space<smem>>) -> (i32, i32) {
    %c0_i32 = arith.constant 0 : i32
    %c0_i32_0 = arith.constant 0 : i32
    %c0_i32_1 = arith.constant 0 : i32
    return %c0_i32, %c0_i32_0 : i32, i32
  }
  func.func @transform_2(%arg0: i32, %arg1: memref<16xi32, #tpu.memory_space<smem>>, %arg2: memref<16xi32, #tpu.memory_space<smem>>) -> (i32, i32) {
    %c0_i32 = arith.constant 0 : i32
    %c0_i32_0 = arith.constant 0 : i32
    %c0_i32_1 = arith.constant 0 : i32
    return %c0_i32, %c0_i32_0 : i32, i32
  }
  func.func @transform_3(%arg0: i32, %arg1: memref<16xi32, #tpu.memory_space<smem>>, %arg2: memref<16xi32, #tpu.memory_space<smem>>) -> (i32, i32) {
    %c0_i32 = arith.constant 0 : i32
    %c0_i32_0 = arith.constant 0 : i32
    %c0_i32_1 = arith.constant 0 : i32
    return %c0_i32, %c0_i32_0 : i32, i32
  }
  func.func @transform_4(%arg0: i32, %arg1: memref<16xi32, #tpu.memory_space<smem>>, %arg2: memref<16xi32, #tpu.memory_space<smem>>) -> (i32, i32) {
    %c0_i32 = arith.constant 0 : i32
    %c0_i32_0 = arith.constant 0 : i32
    %c0_i32_1 = arith.constant 0 : i32
    return %c0_i32, %c0_i32_0 : i32, i32
  }
}

</mosaic_0001>

<bundles_post_ra>
// kernel: manager_forward.1
= control target key start
LH: loop header
LB: loop body
LE: loop exit
PB: predicated region body
PF: predicated region fallthrough
CT: control target
= control target key end

     0   :  { %s717_s0 = inlined_call_operand.vmem [shape: s32[16], index: 0, kind: input, shape index: {}]   ;;  %s718_s2 = inlined_call_operand.vmem [shape: f32[16,128], index: 2, kind: input, shape index: {}]   ;;  %s719_s3 = inlined_call_operand.hbm [shape: f32[128,128], index: 3, kind: input, shape index: {}]   ;;  %s720_s4 = inlined_call_operand.vmem [shape: f32[1,128], index: 4, kind: input, shape index: {}]   ;;  %s721_s5 = inlined_call_operand.vmem [shape: f32[1,128], index: 5, kind: input, shape index: {}]   ;;  %s722_s6 = inlined_call_operand.hbm [shape: f32[16,128], index: 6, kind: output, shape index: {}]   ;;  %s723_s1 = inlined_call_operand.vmem [shape: s32[16], index: 1, kind: input, shape index: {}]  }
   0x1   :  { %726 = sst [smem:[#allocation22_spill]] %s722_s6  ;;  %s11_s23 = sshll.u32 %s717_s0, 4  ;;  %s12_s23 = int_to_ptr.vmem [resolvable:$true] %s11_s23 }
   0x2   :  { %s15_s26 = sshll.u32 %s723_s1, 4  ;;  %s437_s27 = scalar_lea.vmem %s12_s23, 16  ;;  %s16_s26 = int_to_ptr.vmem [resolvable:$true] %s15_s26 }
   0x3   :  { %p438_p0 = scmp.ne.s32.totalorder %s12_s23, %s437_s27  ;;  %p442_p1 = scmp.lt.s32.totalorder %s12_s23, %s12_s23 }
   0x4   :  { %p443_p2 = scmp.lt.s32.totalorder %s437_s27, %s437_s27 }
   0x6   :  { %p444_p3 = por %p443_p2, %p442_p1 }
   0x8   :  { %p445_p4 = pnand %p444_p3, %p438_p0 }
   0xa   :  { %448 = shalt.err (!%p445_p4)  }
   0xb   :  { %s507_s28 = smov [#allocation4]   ;;  %s449_s29 = scalar_lea.vmem %s16_s26, 16 }
   0xc   :  { %14 = dma.vmem_to_smem %s12_s23, 16, %s507_s28, [#allocation3] }
   0xd   :  { %p450_p5 = scmp.ne.s32.totalorder %s16_s26, %s449_s29  ;;  %p454_p6 = scmp.lt.s32.totalorder %s16_s26, %s16_s26 }
   0xe   :  { %p455_p7 = scmp.lt.s32.totalorder %s449_s29, %s449_s29 }
  0x10   :  { %p456_p8 = por %p455_p7, %p454_p6 }
  0x12   :  { %p457_p9 = pnand %p456_p8, %p450_p5 }
  0x14   :  { %460 = shalt.err (!%p457_p9)  }
  0x15   :  { %s508_s0 = smov [#allocation5]  }
  0x16   :  { %18 = dma.vmem_to_smem %s16_s26, 16, %s508_s0, [#allocation3] }
  0x17   :  { %501 = dma.done.wait [#allocation3], 32 }
  0x18   :  { %502 = vsyncadd [#allocation3], 4294967264 }
  0x19   :  { %20 = sfence }
  0x1a   :  { %21 = vsyncpa [#allocation7], 0 }
  0x1b   :  { %22 = vsyncpa [#allocation8], 0  ;;  %s509_s1 = smov [#allocation6]  }
  0x1c   :  { %s30_s30 = sshll.u32 %s509_s1, 4  ;;  %s31_s30 = int_to_ptr.vmem [resolvable:$true] %s30_s30 }
  0x1d   :  { %s469_s7 = scalar_lea.vmem %s31_s30, 2048  ;;  %p474_p11 = scmp.lt.s32.totalorder %s31_s30, %s31_s30 }
  0x1e   :  { %p470_p10 = scmp.ne.s32.totalorder %s31_s30, %s469_s7  ;;  %p475_p12 = scmp.lt.s32.totalorder %s469_s7, %s469_s7 }
  0x20   :  { %p476_p13 = por %p475_p12, %p474_p11 }
  0x22   :  { %p477_p0 = pnand %p476_p13, %p470_p10 }
  0x24   :  { %480 = shalt.err (!%p477_p0)
}
  0x25   :  { %s724_s8 = smov 128   ;;  %s725_s9 = smov 8  }
  0x26   :  { %36 = dma.hbm_to_vmem [thread:$0]  %s719_s3, 2048, %s31_s30, [#allocation7], %s724_s8, %s724_s8, %s725_s9  }
  0x27   :  { %503 = dma.done.wait [#allocation7], 2048  }
  0x28   :  { %504 = vsyncadd [#allocation7], 4294965248  ;;  %v512_v0 = vmov 0.0   ;;  %vm513_vm0 = vmmov 0   ;;  %v62_v1 = vld [vmem:[#allocation6 + $0x70] sm:$0xff]  ;;  %v63_v2 = vld [vmem:[#allocation6 + $0x78] sm:$0xff]  ;;  %v175_v62 = vlaneseq }
  0x29   :  { %401 = vmatprep.subr.bf16.mxu0 %v512_v0  ;;  %417 = vmatprep.mubr.msk.bf16.mxu0 %vm513_vm0, %v512_v0  ;;  %v60_v3 = vld [vmem:[#allocation6 + $0x60] sm:$0xff]  ;;  %v71_v4 = vpack.c.bf16 %v63_v2, %v62_v1  ;;  %v61_v5 = vld [vmem:[#allocation6 + $0x68] sm:$0xff]  ;;  %v58_v7 = vld [vmem:[#allocation6 + $0x50] sm:$0xff]  ;;  %s185_s19 = sld [smem:[#allocation5]] }
  0x2a   :  { %v70_v6 = vpack.c.bf16 %v61_v5, %v60_v3  ;;  %v59_v8 = vld [vmem:[#allocation6 + $0x58] sm:$0xff]  ;;  %v56_v10 = vld [vmem:[#allocation6 + $0x40] sm:$0xff]  ;;  %v57_v11 = vld [vmem:[#allocation6 + $0x48] sm:$0xff]  ;;  %s363_s20 = sld [smem:[#allocation5 + $0x1]] }
  0x2b   :  { %402 = vmatpush3.bf16.msra.mxu0 %v71_v4  ;;  %v69_v9 = vpack.c.bf16 %v59_v8, %v58_v7  ;;  %v68_v12 = vpack.c.bf16 %v57_v11, %v56_v10  ;;  %v54_v13 = vld [vmem:[#allocation6 + $0x30] sm:$0xff]  ;;  %v55_v14 = vld [vmem:[#allocation6 + $0x38] sm:$0xff]  ;;  %v52_v16 = vld [vmem:[#allocation6 + $0x20] sm:$0xff]  ;;  %s365_s21 = sld [smem:[#allocation5 + $0x2]] }
  0x2c   :  { %403 = vmatprep.subr.bf16.mxu0 %v512_v0  ;;  %v67_v15 = vpack.c.bf16 %v55_v14, %v54_v13  ;;  %v53_v17 = vld [vmem:[#allocation6 + $0x28] sm:$0xff]  ;;  %v50_v19 = vld [vmem:[#allocation6 + $0x10] sm:$0xff]  ;;  %v51_v20 = vld [vmem:[#allocation6 + $0x18] sm:$0xff]  ;;  %s584_s22 = sld [smem:[#allocation4]] }
  0x2d   :  { %v66_v18 = vpack.c.bf16 %v53_v17, %v52_v16  ;;  %v65_v21 = vpack.c.bf16 %v51_v20, %v50_v19  ;;  %v48_v22 = vld [vmem:[#allocation6] sm:$0xff]  ;;  %v49_v23 = vld [vmem:[#allocation6 + $0x8] sm:$0xff]  ;;  %v45_v25 = vld [vmem:[%s718_s2] sm:$0xff]  ;;  %s586_s24 = sld [smem:[#allocation4 + $0x1]] }
  0x2e   :  { %v64_v24 = vpack.c.bf16 %v49_v23, %v48_v22  ;;  %v46_v26 = vld [vmem:[%s718_s2 + $0x8] sm:$0xff]  ;;  %v361_v29 = vld [vmem:[%s720_s4] ss:$0 sm:$0xff]  ;;  %s367_s25 = sld [smem:[#allocation5 + $0x3]] }
  0x2f   :  { %404 = vmatpush3.bf16.msra.mxu0 %v70_v6  ;;  %v47_v27 = vpack.c.bf16 %v46_v26, %v45_v25  ;;  %s186_s23 = scvt.s32.f32 %s185_s19  ;;  %s588_s27 = sld [smem:[#allocation4 + $0x2]]  ;;  %v166_v63 = vld [vmem:[%s721_s5] sm:$0x1] }
  0x30   :  { %405 = vmatprep.subr.bf16.mxu0 %v512_v0  ;;  %s195_s26 = scvt.s32.f32 %s363_s20  ;;  %s590_s28 = sld [smem:[#allocation4 + $0x3]] }
  0x31   :  { %s592_s29 = ssub.f32 1.0, %s186_s23  ;;  %s204_s0 = scvt.s32.f32 %s365_s21 }
  0x32   :  { %s369_s1 = sld [smem:[#allocation5 + $0x4]] }
  0x33   :  { %406 = vmatpush3.bf16.msra.mxu0 %v69_v9  ;;  %s594_s30 = ssub.f32 1.0, %s195_s26  ;;  %v190_v11 = vstv %s592_s29 }
  0x34   :  { %407 = vmatprep.subr.bf16.mxu0 %v512_v0  ;;  %s371_s7 = sld [smem:[#allocation5 + $0x5]]  ;;  %s213_s11 = scvt.s32.f32 %s367_s25 }
  0x35   :  { %s596_s10 = ssub.f32 1.0, %s204_s0 }
  0x36   :  { %s373_s3 = sld [smem:[#allocation5 + $0x6]] }
  0x37   :  { %408 = vmatpush3.bf16.msra.mxu0 %v68_v12  ;;  %s598_s12 = sld [smem:[#allocation4 + $0x4]]  ;;  %v199_v12 = vstv %s594_s30  ;;  %v208_v13 = vstv %s596_s10  ;;  %s188_s30 = scalar_lea.vmem [#allocation2], %s584_s22 }
  0x38   :  { %409 = vmatprep.subr.bf16.mxu0 %v512_v0  ;;  %s375_s13 = sld [smem:[#allocation5 + $0x7]]  ;;  %s222_s16 = scvt.s32.f32 %s369_s1 }
  0x39   :  { %s600_s14 = sld [smem:[#allocation4 + $0x5]]  ;;  %s197_s10 = scalar_lea.vmem [#allocation2], %s586_s24 }
  0x3a   :  { %s602_s15 = ssub.f32 1.0, %s213_s11  ;;  %s231_s19 = scvt.s32.f32 %s371_s7 }
  0x3b   :  { %410 = vmatpush3.bf16.msra.mxu0 %v67_v15  ;;  %s377_s20 = sld [smem:[#allocation5 + $0x8]] }
  0x3c   :  { %411 = vmatprep.subr.bf16.mxu0 %v512_v0  ;;  %s610_s21 = sld [smem:[#allocation4 + $0x7]]  ;;  %s240_s25 = scvt.s32.f32 %s373_s3  ;;  %v217_v14 = vstv %s602_s15 }
  0x3d   :  { %s612_s23 = ssub.f32 1.0, %s222_s16  ;;  %s206_s15 = scalar_lea.vmem [#allocation2], %s588_s27 }
  0x3e   :  { %s615_s0 = sld [smem:[#allocation4 + $0x8]]  ;;  %s249_s11 = scvt.s32.f32 %s375_s13 }
  0x3f   :  { %412 = vmatpush3.bf16.msra.mxu0 %v66_v18  ;;  %s617_s8 = ssub.f32 1.0, %s231_s19  ;;  %v226_v15 = vstv %s612_s23 }
  0x40   :  { %413 = vmatprep.subr.bf16.mxu0 %v512_v0  ;;  %s619_s1 = sld [smem:[#allocation4 + $0x9]] }
  0x41   :  { %s623_s7 = ssub.f32 1.0, %s249_s11  ;;  %s258_s9 = scvt.s32.f32 %s377_s20  ;;  %v235_v16 = vstv %s617_s8 }
  0x42   :  { %727 = sst [smem:[#allocation13_spill]] %s610_s21 }
  0x43   :  { %414 = vmatpush3.bf16.msra.mxu0 %v65_v21  ;;  %s625_s6 = sld [smem:[#allocation4 + $0xa]]  ;;  %v253_v18 = vstv %s623_s7  ;;  %s224_s7 = scalar_lea.vmem [#allocation2], %s598_s12 }
  0x44   :  { %415 = vmatprep.subr.bf16.mxu0 %v512_v0  ;;  %728 = sst [smem:[#allocation14_spill]] %s615_s0  ;;  %v176_v0 = vshrl.u32 %v175_v62, 7  ;;  %s514_s0 = smov [#allocation9]  }
  0x45   :  { %s627_s3 = sld [smem:[#allocation5 + $0xa]]  ;;  %s643_s19 = sshll.u32 %s514_s0, 4 }
  0x46   :  { %729 = sst [smem:[#allocation15_spill]] %s619_s1  ;;  %v177_v5 = vsub.s32 0, %v176_v0 }
  0x47   :  { %416 = vmatpush3.bf16.msra.mxu0 %v64_v24  ;;  %s632_s13 = sld [smem:[#allocation4 + $0xb]] }
  0x48   :  { %s636_s11 = sld [smem:[#allocation5 + $0xb]] }
  0x49   :  { %730 = sst [smem:[#allocation16_spill]] %s625_s6 }
  0x4a   :  { %418 = vmatmul.mubr.bf16.vlgmr.msra.gmra.mxu0 %v47_v27  ;;  %s638_s20 = sld [smem:[#allocation4 + $0xc]] }
  0x4b   :  { %s641_s5 = sld [smem:[#allocation5 + $0xd]]  ;;  %s276_s1 = scvt.s32.f32 %s627_s3 }
  0x4c   :  { %733 = sst [smem:[#allocation19_spill]] %s643_s19 }
  0x4d   :  { %731 = sst [smem:[#allocation17_spill]] %s632_s13 }
  0x4e   :  { %s656_s0 = sld [smem:[#allocation4 + $0xe]] }
  0x4f   :  { %s664_s19 = ssub.f32 1.0, %s276_s1 }
  0x50   :  { %732 = sst [smem:[#allocation18_spill]] %s638_s20 }
  0x51   :  { %s649_s20 = sld [smem:[#allocation5 + $0xf]]  ;;  %s303_s3 = scvt.s32.f32 %s641_s5  ;;  %v280_v21 = vstv %s664_s19 }
  0x52   :  { %s737_s8 = sld [smem:[#allocation13_spill]] }
  0x53   :  { %s738_s23 = sld [smem:[#allocation14_spill]] }
  0x54   :  { %736 = sst [smem:[#allocation21_spill]] %s656_s0 }
  0x55   :  { %s739_s22 = sld [smem:[#allocation15_spill]] }
  0x56   :  { %s740_s24 = sld [smem:[#allocation16_spill]] }
  0x57   :  { %s744_s5 = sld [smem:[#allocation21_spill]] }
 0x10a   :  { %v113_v28 = vpop.f32.mrf.mxu0 }
 0x10b   :  { %v571_v32 = vadd.f32 %v361_v29, %v113_v28 }
 0x10c   :  { %v419_v30 = vpop.f32.mrf.mxu0 }
 0x10e   :  { %v116_v31 = vpop.f32.mrf.mxu0 }
 0x10f   :  { %v573_v33 = vadd.f32 %v361_v29, %v116_v31 }
 0x110   :  { %v420_v34 = vpop.f32.mrf.mxu0 }
 0x111   :  { %v120_v35 = vadd.f32 %v573_v33, %v571_v32 }
 0x113   :  { %121 = vadd.xlane.f32.xlu0 %v120_v35 }
 0x19c   :  { %v122_v36 = vpop.xlane.xlu0 %121 }
 0x19d   :  { %v123_v37 = vrot.slane %v122_v36, 4 }
 0x19f   :  { %v124_v38 = vadd.f32 %v123_v37, %v122_v36 }
 0x1a1   :  { %v125_v39 = vrot.slane %v124_v38, 2 }
 0x1a3   :  { %v126_v40 = vadd.f32 %v125_v39, %v124_v38 }
 0x1a5   :  { %v127_v41 = vrot.slane %v126_v40, 1 }
 0x1a7   :  { %v128_v42 = vadd.f32 %v127_v41, %v126_v40 }
 0x1a9   :  { %421 = vpush %v128_v42 }
 0x1da   :  { %s577_s2 = spop %421 }
 0x1db   :  { %s132_s4 = smul.f32 0.00048828125, %s577_s2  ;;  %s621_s2 = ssub.f32 1.0, %s240_s25 }
 0x1dc   :  { %s634_s25 = ssub.f32 1.0, %s258_s9 }
 0x1dd   :  { %v133_v43 = vstv %s132_s4  ;;  %v244_v17 = vstv %s621_s2  ;;  %s215_s2 = scalar_lea.vmem [#allocation2], %s590_s28  ;;  %s742_s28 = sld [smem:[#allocation18_spill]] }
 0x1de   :  { %v134_v44 = vsub.f32 %v571_v32, %v133_v43  ;;  %v135_v45 = vsub.f32 %v573_v33, %v133_v43  ;;  %v262_v19 = vstv %s634_s25  ;;  %s251_s25 = scalar_lea.vmem [#allocation2], %s737_s8 }
 0x1e0   :  { %v136_v46 = vmul.f32 %v134_v44, %v134_v44  ;;  %v137_v47 = vmul.f32 %v135_v45, %v135_v45 }
 0x1e2   :  { %v138_v48 = vadd.f32 %v137_v47, %v136_v46 }
 0x1e4   :  { %139 = vadd.xlane.f32.xlu0 %v138_v48 }
 0x26d   :  { %v140_v49 = vpop.xlane.xlu0 %139 }
 0x26e   :  { %v141_v50 = vrot.slane %v140_v49, 4 }
 0x270   :  { %v142_v51 = vadd.f32 %v141_v50, %v140_v49 }
 0x272   :  { %v143_v52 = vrot.slane %v142_v51, 2 }
 0x274   :  { %v144_v53 = vadd.f32 %v143_v52, %v142_v51 }
 0x276   :  { %v145_v54 = vrot.slane %v144_v53, 1 }
 0x278   :  { %v146_v55 = vadd.f32 %v145_v54, %v144_v53 }
 0x27a   :  { %423 = vpush %v146_v55 }
 0x2ab   :  { %s424_s17 = spop %423 }
 0x2ac   :  { %s150_s18 = smul.f32 0.00048828125, %s424_s17 }
 0x2ad   :  { %s606_s17 = smul.f32 0.1, %s132_s4  ;;  %s379_s4 = sld [smem:[#allocation5 + $0x9]] }
 0x2ae   :  { %v151_v56 = vstv %s150_s18  ;;  %s608_s18 = sld [smem:[#allocation4 + $0x6]] }
 0x2af   :  { %435 = vrsqrt.f32 %v151_v56  ;;  %vm154_vm1 = vcmp.eq.f32.partialorder %v151_v56, inf  ;;  %v157_v59 = vand.u32 2147483648, %v151_v56  ;;  %vm156_vm2 = vcmp.eq.f32.partialorder %v151_v56, 0.0  ;;  %s734_s9 = smul.f32 0.5, %s606_s17 }
 0x2b0   :  { %v169_v3 = vstv %s606_s17  ;;  %s285_s17 = scvt.s32.f32 %s636_s11  ;;  %s321_s11 = scvt.s32.f32 %s649_s20 }
 0x2b1   :  { %v172_v6 = vstv %s734_s9  ;;  %s661_s9 = sld [smem:[#allocation4 + $0xf]]  ;;  %s260_s20 = scalar_lea.vmem [#allocation2], %s738_s23 }
 0x2b2   :  { %s688_s29 = ssub.f32 1.0, %s321_s11 }
 0x2b3   :  { %s267_s6 = scvt.s32.f32 %s379_s4  ;;  %s653_s4 = sld [smem:[#allocation4 + $0xd]] }
 0x2b4   :  { %s242_s27 = scalar_lea.vmem [#allocation2], %s608_s18  ;;  %s278_s18 = scalar_lea.vmem [#allocation2], %s740_s24  ;;  %v325_v47 = vstv %s688_s29 }
 0x2b5   :  { %s651_s13 = ssub.f32 1.0, %s267_s6 }
 0x2b7   :  { %v271_v20 = vstv %s651_s13  ;;  %s233_s13 = scalar_lea.vmem [#allocation2], %s600_s14  ;;  %s269_s14 = scalar_lea.vmem [#allocation2], %s739_s22 }
 0x2b9   :  { %735 = sst [smem:[#allocation20_spill]] %s653_s4 }
 0x2ba   :  { %s667_s4 = ssub.f32 1.0, %s285_s17  ;;  %s314_s17 = scalar_lea.vmem [#allocation2], %s744_s5 }
 0x2bb   :  { %s743_s12 = sld [smem:[#allocation20_spill]] }
 0x2bc   :  { %v436_v57 = vpop.eup %435  ;;  %v289_v22 = vstv %s667_s4 }
 0x2bd   :  { %v153_v58 = vmul.f32 %v436_v57, %v151_v56 }
 0x2bf   :  { %v155_v60 = vsel %vm154_vm1, %v151_v56, %v153_v58 }
 0x2c0   :  { %v158_v61 = vsel %vm156_vm2, %v157_v59, %v155_v60 }
 0x2c1   :  { %425 = vpush %v158_v61  ;;  %s305_s4 = scalar_lea.vmem [#allocation2], %s743_s12 }
 0x2f2   :  { %s426_s16 = spop %425 }
 0x2f3   :  { %s162_s26 = smul.f32 0.2, %s426_s16  ;;  %s385_s16 = sld [smem:[#allocation5 + $0xc]] }
 0x2f5   :  { %v167_v1 = vstv %s162_s26  ;;  %s647_s26 = sld [smem:[#allocation5 + $0xe]] }
 0x2f6   :  { %v168_v2 = vmul.f32 %v167_v1, %v166_v63 }
 0x2f8   :  { %v170_v4 = vadd.f32 %v169_v3, %v168_v2 }
 0x2f9   :  { %s294_s6 = scvt.s32.f32 %s385_s16  ;;  %s676_s16 = ssub.f32 1.0, %s303_s3 }
 0x2fa   :  { %v173_v7 = vsub.f32 %v170_v4, %v172_v6 }
 0x2fb   :  { %s312_s0 = scvt.s32.f32 %s647_s26  ;;  %s670_s21 = ssub.f32 1.0, %s294_s6 }
 0x2fc   :  { %v178_v8 = vrot.slane %v173_v7, %v177_v5  ;;  %s296_s26 = scalar_lea.vmem [#allocation2], %s742_s28  ;;  %s323_s6 = scalar_lea.vmem [#allocation2], %s661_s9 }
 0x2fd   :  { %s682_s1 = ssub.f32 1.0, %s312_s0  ;;  %v298_v26 = vstv %s670_s21 }
 0x2fe   :  { %v180_v9 = vadd.f32 %v178_v8, %v571_v32  ;;  %v181_v10 = vadd.f32 %v178_v8, %v573_v33  ;;  %v307_v33 = vstv %s676_s16  ;;  %s741_s21 = sld [smem:[#allocation17_spill]] }
 0x2ff   :  { %v316_v40 = vstv %s682_s1  ;;  %s745_s0 = sld [smem:[#allocation19_spill]]  ;;  %s334_s0 = int_to_ptr.vmem [resolvable:$true] %s745_s0 }
 0x300   :  { %182 = vst [vmem:[#allocation2] sm:$0xff] %v180_v9  ;;  %183 = vst [vmem:[#allocation2 + $0x8] sm:$0xff] %v181_v10  ;;  %s481_s3 = scalar_lea.vmem %s334_s0, 256  ;;  %p486_p2 = scmp.lt.s32.totalorder %s334_s0, %s334_s0 }
 0x301   :  { %p482_p1 = scmp.ne.s32.totalorder %s334_s0, %s481_s3  ;;  %p487_p3 = scmp.lt.s32.totalorder %s481_s3, %s481_s3 }
 0x303   :  { %p488_p4 = por %p487_p3, %p486_p2 }
 0x304   :  { %s287_s19 = scalar_lea.vmem [#allocation2], %s741_s21 }
 0x305   :  { %p489_p5 = pnand %p488_p4, %p482_p1 }
 0x307   :  { %v189_v23 = vld [vmem:[%s188_s30] sm:$0x1] }
 0x308   :  { %v198_v24 = vld [vmem:[%s197_s10] sm:$0x1]  ;;  %v191_v27 = vmul.f32 %v190_v11, %v189_v23 }
 0x309   :  { %v207_v25 = vld [vmem:[%s206_s15] sm:$0x1]  ;;  %v200_v28 = vmul.f32 %v199_v12, %v198_v24 }
 0x30a   :  { %v209_v29 = vmul.f32 %v208_v13, %v207_v25  ;;  %v216_v30 = vld [vmem:[%s215_s2] sm:$0x1]  ;;  %192 = vst [vmem:[#allocation9] sm:$0x1] %v191_v27 }
 0x30b   :  { %v225_v31 = vld [vmem:[%s224_s7] sm:$0x1]  ;;  %v218_v34 = vmul.f32 %v217_v14, %v216_v30  ;;  %201 = vst [vmem:[#allocation9 + $0x1] sm:$0x1] %v200_v28 }
 0x30c   :  { %v234_v32 = vld [vmem:[%s233_s13] sm:$0x1]  ;;  %v227_v35 = vmul.f32 %v226_v15, %v225_v31  ;;  %210 = vst [vmem:[#allocation9 + $0x2] sm:$0x1] %v209_v29 }
 0x30d   :  { %v236_v36 = vmul.f32 %v235_v16, %v234_v32  ;;  %v243_v37 = vld [vmem:[%s242_s27] sm:$0x1]  ;;  %219 = vst [vmem:[#allocation9 + $0x3] sm:$0x1] %v218_v34 }
 0x30e   :  { %v252_v38 = vld [vmem:[%s251_s25] sm:$0x1]  ;;  %v245_v41 = vmul.f32 %v244_v17, %v243_v37  ;;  %228 = vst [vmem:[#allocation9 + $0x4] sm:$0x1] %v227_v35 }
 0x30f   :  { %v261_v39 = vld [vmem:[%s260_s20] sm:$0x1]  ;;  %v254_v42 = vmul.f32 %v253_v18, %v252_v38  ;;  %237 = vst [vmem:[#allocation9 + $0x5] sm:$0x1] %v236_v36 }
 0x310   :  { %v263_v43 = vmul.f32 %v262_v19, %v261_v39  ;;  %v270_v44 = vld [vmem:[%s269_s14] sm:$0x1]  ;;  %246 = vst [vmem:[#allocation9 + $0x6] sm:$0x1] %v245_v41 }
 0x311   :  { %v279_v45 = vld [vmem:[%s278_s18] sm:$0x1]  ;;  %v272_v48 = vmul.f32 %v271_v20, %v270_v44  ;;  %255 = vst [vmem:[#allocation9 + $0x7] sm:$0x1] %v254_v42 }
 0x312   :  { %v288_v46 = vld [vmem:[%s287_s19] sm:$0x1]  ;;  %v281_v49 = vmul.f32 %v280_v21, %v279_v45  ;;  %264 = vst [vmem:[#allocation9 + $0x8] sm:$0x1] %v263_v43 }
 0x313   :  { %v290_v50 = vmul.f32 %v289_v22, %v288_v46  ;;  %v297_v51 = vld [vmem:[%s296_s26] sm:$0x1]  ;;  %273 = vst [vmem:[#allocation9 + $0x9] sm:$0x1] %v272_v48 }
 0x314   :  { %v306_v52 = vld [vmem:[%s305_s4] sm:$0x1]  ;;  %v299_v54 = vmul.f32 %v298_v26, %v297_v51  ;;  %282 = vst [vmem:[#allocation9 + $0xa] sm:$0x1] %v281_v49 }
 0x315   :  { %v315_v53 = vld [vmem:[%s314_s17] sm:$0x1]  ;;  %v308_v55 = vmul.f32 %v307_v33, %v306_v52  ;;  %291 = vst [vmem:[#allocation9 + $0xb] sm:$0x1] %v290_v50 }
 0x316   :  { %v317_v56 = vmul.f32 %v316_v40, %v315_v53  ;;  %v324_v57 = vld [vmem:[%s323_s6] sm:$0x1]  ;;  %300 = vst [vmem:[#allocation9 + $0xc] sm:$0x1] %v299_v54 }
 0x317   :  { %v326_v58 = vmul.f32 %v325_v47, %v324_v57  ;;  %309 = vst [vmem:[#allocation9 + $0xd] sm:$0x1] %v308_v55 }
 0x318   :  { %318 = vst [vmem:[#allocation9 + $0xe] sm:$0x1] %v317_v56 }
 0x319   :  { %327 = vst [vmem:[#allocation9 + $0xf] sm:$0x1] %v326_v58 }
 0x31a   :  { %492 = shalt.err (!%p489_p5)
}
 0x31b   :  { %s746_s11 = smov 8   ;;  %s747_s16 = smov 128  }
 0x31c   :  { %s748_s29 = sld [smem:[#allocation22_spill]] }
 0x322   :  { %339 = dma.vmem_to_hbm [thread:$0]  %s334_s0, 256, %s748_s29, [#allocation8], %s747_s16, %s747_s16, %s746_s11  }
 0x323   :  { %505 = dma.done.wait [#allocation8], 256  }
 0x324   :  { %506 = vsyncadd [#allocation8], 4294967040 }
 0x325   :  { %343 = vsyncpa [#allocation7], 1 }
 0x326   :  { %344 = vsyncpa [#allocation8], 1 }

</bundles_post_ra>
